<compile_context>
chip_gen: v7x
topology: tpu7x:2x2x1
jax: 0.10.0
libtpu: 0.0.40
codegen_flags: <defaults>
</compile_context>

<pallas_src>
import functools

import jax
import jax.numpy as jnp
from jax.experimental import pallas as pl
from jax.experimental.pallas import tpu as pltpu

LATENT_DIM = 100


def _round_up(x, m):
    return ((x + m - 1) // m) * m


def _sublane_multiple(dtype):
    return {4: 8, 2: 16, 1: 32}[jnp.dtype(dtype).itemsize]


def _vmem_limit_bytes(need_bytes):
    """Generation-aware scoped-VMEM cap: v7x has 64 MiB physical, v5e/v6e 128 MiB."""
    try:
        kind = jax.devices()[0].device_kind.lower()
    except Exception:  # pragma: no cover - defensive fallback
        kind = ""
    cap = 48 * 2**20 if "v7" in kind else 64 * 2**20
    return int(min(max(2 * need_bytes, 8 * 2**20), cap))


# ---------------------------------------------------------------------------
# Kernel 1: full rate matrix  [U, I]
#   rate_matrix = [latent | alpha*asp | 1 | 0..] @ [latent | asp | bias | 0..].T
#   One matmul per (tu, tn) tile; RHS pre-transposed and lane-dense; f32
#   accumulation; store cast to out_ref.dtype (optionally bf16).
# ---------------------------------------------------------------------------
def _rate_matrix_kernel(uf_ref, ifT_ref, out_ref):
    acc = jnp.dot(uf_ref[...], ifT_ref[...], preferred_element_type=jnp.float32)
    out_ref[...] = acc.astype(out_ref.dtype)


def rate_matrix_pallas(user_feat, item_feat, *, tu=1024, tn=2048,
                       compute_dtype=jnp.bfloat16, out_dtype=jnp.float32):
    """user_feat: (U, K_pad) f32, item_feat: (I, K_pad) f32 (bias already folded)."""
    U, K_pad = user_feat.shape
    I, _ = item_feat.shape

    sub = max(_sublane_multiple(compute_dtype), _sublane_multiple(out_dtype))
    tu_eff = min(tu, _round_up(U, sub))            # big M tile, dtype-aware sublane align
    tn_eff = min(tn, _round_up(I, 128))            # lane-dense N tile
    # v7x megacore: prefer a grid with >=2 steps on a parallel axis when possible.
    if _round_up(U, tu_eff) == tu_eff and _round_up(I, tn_eff) == tn_eff:
        if tn_eff >= 256:
            tn_eff = _round_up(tn_eff // 2, 128)
        elif tu_eff >= 2 * sub:
            tu_eff = _round_up(tu_eff // 2, sub)
    U_pad = _round_up(U, tu_eff)
    I_pad = _round_up(I, tn_eff)

    uf = jnp.pad(user_feat, ((0, U_pad - U), (0, 0))).astype(compute_dtype)
    ifT = jnp.pad(item_feat, ((0, I_pad - I), (0, 0))).astype(compute_dtype).T  # (K_pad, I_pad)

    in_sz = jnp.dtype(compute_dtype).itemsize
    out_sz = jnp.dtype(out_dtype).itemsize
    need = (2 * (tu_eff * K_pad + K_pad * tn_eff) * in_sz   # double-buffered LHS/RHS
            + 2 * tu_eff * tn_eff * out_sz)                 # double-buffered output

    out = pl.pallas_call(
        _rate_matrix_kernel,
        out_shape=jax.ShapeDtypeStruct((U_pad, I_pad), out_dtype),
        grid_spec=pltpu.PrefetchScalarGridSpec(
            num_scalar_prefetch=0,
            grid=(U_pad // tu_eff, I_pad // tn_eff),
            in_specs=[
                pl.BlockSpec((tu_eff, K_pad), lambda i, j: (i, 0)),   # user features tile
                pl.BlockSpec((K_pad, tn_eff), lambda i, j: (0, j)),   # item features^T tile
            ],
            out_specs=pl.BlockSpec((tu_eff, tn_eff), lambda i, j: (i, j)),
        ),
        compiler_params=pltpu.CompilerParams(
            dimension_semantics=("parallel", "parallel"),
            vmem_limit_bytes=_vmem_limit_bytes(need)),
    )(uf, ifT)
    return out[:U, :I]


# ---------------------------------------------------------------------------
# Kernel 2: pairwise BPR scores xuij and per-pair log-sigmoid terms.
#   Inputs arrive transposed (K_pad, N): the per-pair dot product is a sublane
#   reduction and both outputs are lane-dense (1, tr) rows. Grid is fully
#   parallel; the scalar loss reduction happens in XLA.
# ---------------------------------------------------------------------------
def _pairwise_loss_kernel(uT_ref, dT_ref, xuij_ref, logp_ref, *, block_cols, n_valid):
    pid = pl.program_id(0)

    # Column-wise dot product -> lane-dense (1, tr) row of scores.
    x = jnp.sum(uT_ref[...] * dT_ref[...], axis=0, keepdims=True)
    xuij_ref[...] = x

    # log sigmoid(x) = -softplus(-x) = min(x, 0) - log(1 + exp(-|x|)).
    logp = jnp.minimum(x, 0.0) - jnp.log(1.0 + jnp.exp(-jnp.abs(x)))
    cols = pid * block_cols + jax.lax.broadcasted_iota(jnp.int32, x.shape, 1)
    logp_ref[...] = jnp.where(cols < n_valid, logp, 0.0)   # mask padded pairs


def pairwise_loss_pallas(u_gT, d_gT, n_valid, *, tr=2048):
    """u_gT/d_gT: (K_pad, N) f32 (transposed). Returns (xuij (N,), scalar loss)."""
    K_pad, N = u_gT.shape
    tr_eff = min(tr, _round_up(N, 128))
    N_pad = _round_up(N, tr_eff)
    pad = ((0, 0), (0, N_pad - N))
    u_p = jnp.pad(u_gT, pad)
    d_p = jnp.pad(d_gT, pad)

    kernel = functools.partial(_pairwise_loss_kernel, block_cols=tr_eff, n_valid=n_valid)
    xuij, logp = pl.pallas_call(
        kernel,
        out_shape=(jax.ShapeDtypeStruct((1, N_pad), jnp.float32),
                   jax.ShapeDtypeStruct((1, N_pad), jnp.float32)),
        grid_spec=pltpu.PrefetchScalarGridSpec(
            num_scalar_prefetch=0,
            grid=(N_pad // tr_eff,),
            in_specs=[
                pl.BlockSpec((K_pad, tr_eff), lambda i: (0, i)),
                pl.BlockSpec((K_pad, tr_eff), lambda i: (0, i)),
            ],
            out_specs=[
                pl.BlockSpec((1, tr_eff), lambda i: (0, i)),   # lane-dense xuij row
                pl.BlockSpec((1, tr_eff), lambda i: (0, i)),   # lane-dense masked logp row
            ],
        ),
        compiler_params=pltpu.CompilerParams(
            dimension_semantics=("parallel",)),
    )(u_p, d_p)
    loss = -jnp.sum(logp) / jnp.float32(n_valid)
    return xuij[0, :N], loss


# ---------------------------------------------------------------------------
# Module wrapper (parameter init + forward)
# ---------------------------------------------------------------------------
def init_params(key, num_users, num_items):
    k1, k2 = jax.random.split(key)
    return {
        "item_bias": jnp.zeros((num_items,), jnp.float32),
        "uid_userOffset": jnp.zeros((num_users, 1), jnp.float32),
        "iid_itemOffset": jnp.zeros((num_items, 1), jnp.float32),
        "user_latent": 0.01 * jax.random.normal(k1, (num_users, LATENT_DIM), jnp.float32),
        "item_latent": 0.01 * jax.random.normal(k2, (num_items, LATENT_DIM), jnp.float32),
        "alpha1": jnp.float32(1.0),
    }


def anr_rating_pred_forward(params, userAspRep, itemAspRep, userAspImpt, itemAspImpt,
                            user_b, item_b, n_item_b, *,
                            compute_dtype=jnp.bfloat16, out_dtype=jnp.float32):
    # TODO(synk): dropout implemented as identity (eval mode); training-mode RNG mask not reproduced.
    del userAspImpt, itemAspImpt  # unused in the PyTorch forward as well

    alpha = params["alpha1"]
    user_latent = params["user_latent"]
    item_latent = params["item_latent"]
    item_bias = params["item_bias"].astype(jnp.float32)

    # Offset adds (broadcast) — glue in plain JAX.
    userAspRep = userAspRep + params["uid_userOffset"]
    itemAspRep = itemAspRep + params["iid_itemOffset"]

    # Fold alpha into the user-side aspect block and ride item_bias along in one
    # of the otherwise-wasted K padding columns (user side carries a constant 1):
    #   rate_matrix = [latent | alpha*asp | 1 | 0..] @ [latent | asp | bias | 0..].T
    # NOTE: on the bf16 MXU path item_bias is quantized to bf16 with the other
    # features; keep compute_dtype=float32 if full bias precision matters.
    H = userAspRep.shape[1]
    K_used = LATENT_DIM + H + 1                       # +1 for the bias column
    K_pad = _round_up(K_used, 128)
    U = user_latent.shape[0]
    I = item_latent.shape[0]
    user_feat = jnp.concatenate(
        [user_latent, alpha * userAspRep, jnp.ones((U, 1), jnp.float32)], axis=1)
    item_feat = jnp.concatenate(
        [item_latent, itemAspRep, item_bias.reshape(I, 1)], axis=1)
    user_feat = jnp.pad(user_feat, ((0, 0), (0, K_pad - K_used))).astype(jnp.float32)
    item_feat = jnp.pad(item_feat, ((0, 0), (0, K_pad - K_used))).astype(jnp.float32)

    # --- full rate matrix (Pallas kernel 1) ---
    rate_matrix = rate_matrix_pallas(user_feat, item_feat,
                                     compute_dtype=compute_dtype, out_dtype=out_dtype)

    # --- pairwise BPR path (Pallas kernel 2, f32) ---
    # Gathers and (i - j) pre-subtraction in XLA (one third less kernel-2 input
    # traffic; the bias difference rides in the folded column). Data is handed to
    # the kernel transposed so the outputs are lane-dense.
    # TODO(synk): fully fusing the row gathers into the kernel would require
    # per-row ~512 B manual DMAs off scalar-prefetched indices; kept in XLA.
    B, T = user_b.shape
    ub = user_b.reshape(-1)
    ib = item_b.reshape(-1)
    jb = n_item_b.reshape(-1)
    u_gT = jnp.take(user_feat, ub, axis=0).T                              # (K_pad, N)
    d_gT = (jnp.take(item_feat, ib, axis=0)
            - jnp.take(item_feat, jb, axis=0)).T                          # (K_pad, N)

    xuij_flat, loss = pairwise_loss_pallas(u_gT, d_gT, B * T)
    xuij = xuij_flat.reshape(B, T)
    return rate_matrix, loss, xuij


# ---------------------------------------------------------------------------
# Pure-JAX reference for verification
# ---------------------------------------------------------------------------
def reference_forward(params, userAspRep, itemAspRep, user_b, item_b, n_item_b):
    alpha = params["alpha1"]
    ul, il, ib = params["user_latent"], params["item_latent"], params["item_bias"]
    ua = userAspRep + params["uid_userOffset"]
    ia = itemAspRep + params["iid_itemOffset"]
    rm1 = ul @ il.T
    rm2 = ua @ ia.T
    rate_matrix = rm1 + alpha * rm2 + ib
    rm1_i = jnp.sum(ul[user_b] * il[item_b], axis=2)
    rm1_j = jnp.sum(ul[user_b] * il[n_item_b], axis=2)
    rm2_i = jnp.sum(ua[user_b] * ia[item_b], axis=2)
    rm2_j = jnp.sum(ua[user_b] * ia[n_item_b], axis=2)
    rmi = rm1_i + alpha * rm2_i + ib[item_b]
    rmj = rm1_j + alpha * rm2_j + ib[n_item_b]
    xuij = rmi - rmj
    loss = -jnp.mean(jnp.log(jnp.clip(jax.nn.sigmoid(xuij), 1e-10, 1.0)))
    return rate_matrix, loss, xuij


if __name__ == "__main__":
    num_users, num_items, num_aspect = 32, 48, 8
    B, T = 2, 8

    key = jax.random.PRNGKey(0)
    kp, k1, k2, k3, k4, k5, k6, k7, k8 = jax.random.split(key, 9)
    params = init_params(kp, num_users, num_items)
    # Non-trivial bias / offsets / alpha so the folded-bias and alpha paths are exercised.
    params["item_bias"] = 0.1 * jax.random.normal(k6, (num_items,), jnp.float32)
    params["uid_userOffset"] = 0.05 * jax.random.normal(k7, (num_users, 1), jnp.float32)
    params["iid_itemOffset"] = 0.05 * jax.random.normal(k8, (num_items, 1), jnp.float32)
    params["alpha1"] = jnp.float32(0.8)

    userAspRep = jax.random.normal(k1, (num_users, num_aspect), jnp.float32)
    itemAspRep = jax.random.normal(k2, (num_items, num_aspect), jnp.float32)
    userAspImpt = jnp.zeros((num_users, num_aspect), jnp.float32)   # unused in forward
    itemAspImpt = jnp.zeros((num_items, num_aspect), jnp.float32)   # unused in forward
    user_b = jax.random.randint(k3, (B, T), 0, num_users)
    item_b = jax.random.randint(k4, (B, T), 0, num_items)
    n_item_b = jax.random.randint(k5, (B, T), 0, num_items)

    rm_ref, loss_ref, xuij_ref = reference_forward(params, userAspRep, itemAspRep,
                                                   user_b, item_b, n_item_b)

    # --- f32 MXU path, f32 output: tight tolerances ---
    rate_matrix, loss, xuij = jax.block_until_ready(
        anr_rating_pred_forward(params, userAspRep, itemAspRep, userAspImpt, itemAspImpt,
                                user_b, item_b, n_item_b,
                                compute_dtype=jnp.float32, out_dtype=jnp.float32))
    assert rate_matrix.shape == (num_users, num_items)
    assert jnp.allclose(rate_matrix, rm_ref, atol=1e-4, rtol=1e-4)
    assert jnp.allclose(xuij, xuij_ref, atol=1e-4, rtol=1e-4)
    assert jnp.allclose(loss, loss_ref, atol=1e-5, rtol=1e-5)

    # --- bf16 MXU path + bf16 rate-matrix store (halved writeback): loose tolerance ---
    rate_matrix_bf, loss_bf, xuij_bf = jax.block_until_ready(
        anr_rating_pred_forward(params, userAspRep, itemAspRep, userAspImpt, itemAspImpt,
                                user_b, item_b, n_item_b,
                                compute_dtype=jnp.bfloat16, out_dtype=jnp.bfloat16))
    assert jnp.allclose(rate_matrix_bf.astype(jnp.float32), rm_ref, atol=1e-1, rtol=5e-2)
    assert jnp.allclose(xuij_bf, xuij_ref, atol=1e-4, rtol=1e-4)    # pairwise path stays f32
    assert jnp.allclose(loss_bf, loss_ref, atol=1e-5, rtol=1e-5)

    print("KERNEL_OK")
</pallas_src>

<mosaic_0001>
module attributes {stable_mosaic.version = 11 : i64} {
  func.func @_rate_matrix_kernel(%arg0: i32, %arg1: i32, %arg2: memref<16x128xf32, #tpu.memory_space<vmem>>, %arg3: memref<128x128xf32, #tpu.memory_space<vmem>>, %arg4: memref<16x128xf32, #tpu.memory_space<vmem>>) attributes {dimension_semantics = [#tpu.dimension_semantics<parallel>, #tpu.dimension_semantics<parallel>], iteration_bounds = array<i64: 2, 1>, scalar_prefetch = 0 : i64, scratch_operands = 0 : i64, tpu.core_type = #tpu.core_type<tc>, window_params = [{transform_indices = @transform_0, window_bounds = array<i64: 16, 128>}, {transform_indices = @transform_1, window_bounds = array<i64: 128, 128>}, {transform_indices = @transform_2, window_bounds = array<i64: 16, 128>}]} {
    %c0 = arith.constant 0 : index
    %c0_0 = arith.constant 0 : index
    %0 = vector.load %arg2[%c0, %c0_0] : memref<16x128xf32, #tpu.memory_space<vmem>>, vector<16x128xf32>
    %c0_1 = arith.constant 0 : index
    %c0_2 = arith.constant 0 : index
    %1 = vector.load %arg3[%c0_1, %c0_2] : memref<128x128xf32, #tpu.memory_space<vmem>>, vector<128x128xf32>
    %cst = arith.constant dense<0.000000e+00> : vector<16x128xf32>
    %2 = tpu.matmul %0, %1, %cst {dimension_numbers = #tpu.dot_dimension_numbers<[1], [0], [0], [1], [0, 0, 1, 1], [], []>} : vector<16x128xf32>, vector<128x128xf32>, vector<16x128xf32> -> vector<16x128xf32>
    %c0_3 = arith.constant 0 : index
    %c0_4 = arith.constant 0 : index
    %3 = vector.load %arg4[%c0_3, %c0_4] : memref<16x128xf32, #tpu.memory_space<vmem>>, vector<16x128xf32>
    tpu.vector_store %arg4[%c0_3, %c0_4], %2 {strides = array<i32>} : memref<16x128xf32, #tpu.memory_space<vmem>>, vector<16x128xf32>,
    return
  }
  func.func @transform_0(%arg0: i32, %arg1: i32) -> (i32, i32) {
    %c0_i32 = arith.constant 0 : i32
    %c0_i32_0 = arith.constant 0 : i32
    return %arg0, %c0_i32 : i32, i32
  }
  func.func @transform_1(%arg0: i32, %arg1: i32) -> (i32, i32) {
    %c0_i32 = arith.constant 0 : i32
    %c0_i32_0 = arith.constant 0 : i32
    return %c0_i32, %arg1 : i32, i32
  }
  func.func @transform_2(%arg0: i32, %arg1: i32) -> (i32, i32) {
    %c0_i32 = arith.constant 0 : i32
    return %arg0, %arg1 : i32, i32
  }
}

</mosaic_0001>

<bundles_post_ra>
// kernel: tpu_custom_call.1
= control target key start
LH: loop header
LB: loop body
LE: loop exit
PB: predicated region body
PF: predicated region fallthrough
CT: control target
= control target key end

     0   :  { %7 = vsyncpa [#allocation3], 0  ;;  %s987_s0 = inlined_call_operand.hbm [shape: f32[32,128], index: 0, kind: input, shape index: {}]   ;;  %s988_s1 = inlined_call_operand.hbm [shape: f32[128,128], index: 1, kind: input, shape index: {}]   ;;  %s989_s2 = inlined_call_operand.hbm [shape: f32[32,128], index: 2, kind: output, shape index: {}]  }
   0x1   :  { %9 = vsyncpa [#allocation3 + $0x1], 0 }
   0x2   :  { %10 = vsyncpa [#allocation6], 0 }
   0x3   :  { %11 = vsyncpa [#allocation4], 0 }
   0x4   :  { %13 = vsyncpa [#allocation4 + $0x1], 0  ;;  %s754_s9 = smov 0   ;;  %s756_s10 = smov 0  }
   0x5   :  { %s758_s11 = smov 0   ;;  %s760_s12 = smov 0  }
   0x6   :  { %s762_s13 = smov 0   ;;  %s764_s14 = smov 0  }
   0x7 LB: > { %s405_s15 = sadd.s32 4294967295, %s730_s14   ;;  %s406_s16 = sadd.s32 4294967294, %s730_s14   ;;  %s730_s14 = sphi %s764_s14, %s19_s14   ;;  %s726_s13 = sphi %s762_s13, %s1013_s13   ;;  %s722_s12 = sphi %s760_s12, %s1012_s12   ;;  %s718_s11 = sphi %s758_s11, %s1011_s11   ;;  %s714_s10 = sphi %s756_s10, %s1010_s10   ;;  %s710_s9 = sphi %s754_s9, %s1009_s9  }
   0x8   : > { %p51_p0 = scmp.ne.s32.totalorder %s714_s10, %s710_s9  ;;  %p788_p1 = scmp.eq.s32.totalorder %s405_s15, 0 }
   0x9   : > { %p792_p2 = scmp.eq.s32.totalorder %s405_s15, 1  ;;  %p109_p3 = scmp.eq.s32.totalorder %s406_s16, 1 }
   0xa   : > { %s994_s17 = scalar_select %p788_p1, 1, 0 }
   0xb   : > { %s995_s18 = scalar_select %p792_p2, 1, 0 }
   0xc   : > { %p798_p4 = por %p788_p1, %p51_p0  ;;  %p407_p5 = scmp.ge.s32.totalorder %s730_s14, 1 }
   0xd   : > { %p803_p6 = por %p109_p3, %p51_p0  ;;  %p116_p7 = scmp.lt.s32.totalorder %s730_s14, 3 }
   0xe   : > { %s996_s19 = scalar_select %p798_p4, 1, 0 }
   0xf   : > { %s997_s20 = scalar_select %p803_p6, 1, 0 }
  0x10   : > { %p808_p8 = pnand %p407_p5, %p116_p7  ;;  %s732_s22 = smov [#allocation5]  }
  0x11   : > { %s130_s23 = sshll.u32 %s732_s22, 4  ;;  %s31_s25 = sadd.s32 1, %s726_s13  ;;  %s131_s23 = int_to_ptr.vmem [resolvable:$true] %s130_s23 }
  0x12   : > { %s998_s21 = scalar_select %p808_p8, 1, 0 }
  0x13   : > { %p517_p9 = pneg %p808_p8  ;;  %s586_s28 = scalar_lea.hbm %s988_s1, 2048 }
  0x14   : > { %p587_p12 = scmp.ne.s32.totalorder %s988_s1, %s586_s28  ;;  %p593_p5 = scmp.lt.u32.totalorder %s586_s28, %s988_s1 }
  0x15   : > { %p817_p11 = pnand %p517_p9, %p788_p1 }
  0x17   : > { %p588_p13 = pneg %p817_p11 }
  0x19   : > { %p589_p0 = pnand %p588_p13, %p587_p12 }
  0x1b   : > { %p590_p3 = pneg %p589_p0 }
  0x1d   : > { %p595_p7 = pnand %p593_p5, %p590_p3 }
  0x1f   : > { %598 = shalt.err (!%p595_p7)
}
  0x20   : > { %s599_s5 = scalar_lea.vmem %s131_s23, 2048  ;;  %p607_p1 = scmp.lt.s32.totalorder %s131_s23, %s131_s23 }
  0x21   : > { %p600_p9 = scmp.ne.s32.totalorder %s131_s23, %s599_s5  ;;  %p608_p4 = scmp.lt.s32.totalorder %s599_s5, %s599_s5 }
  0x23   : > { %p602_p10 = pnand %p600_p9, %p588_p13  ;;  %p609_p8 = por %p608_p4, %p607_p1 }
  0x25   : > { %p603_p6 = pneg %p602_p10 }
  0x27   : > { %p610_p2 = pnand %p609_p8, %p603_p6 }
  0x29   : > { %613 = shalt.err (!%p610_p2)
}
  0x2a   : > { %s733_s6 = smov 128   ;;  %s734_s7 = smov 8  }
  0x2b   : > { %520 = dma.hbm_to_vmem [thread:$0]  (!%p817_p11), %s988_s1, 2048, %s131_s23, [#allocation6], %s733_s6, %s733_s6, %s734_s7  }
  0x2c   : > { %p33_p1 = scmp.ge.s32.totalorder %s31_s25, 2  ;;  %s38_s16 = sadd.s32 1, %s718_s11 }
  0x2d   : > { %p45_p2 = scmp.ne.s32.totalorder %s718_s11, %s714_s10  ;;  %p46_p4 = scmp.eq.s32.totalorder %s730_s14, 0 }
  0x2e   : > { %s1015_s25 = smov (%p33_p1, %s31_s25), 0  ;;  %p1001_p8 = scmp.ne.s32.totalorder %s995_s18, 0 }
  0x2f   : > { %p847_p6 = por %p46_p4, %p45_p2  ;;  %s35_s26 = ssub.s32 %s726_s13, %s1015_s25 }
  0x30   : > { %p853_p10 = por %p1001_p8, %p45_p2  ;;  %p530_p12 = scmp.lt.s32.totalorder %s730_s14, 2 }
  0x31   : > { %p36_p11 = scmp.eq.s32.totalorder %s35_s26, 0  ;;  %s144_s23 = sand.u32 1, %s718_s11  }
  0x32   : > { %s410_s27 = sshll.u32 %s144_s23, 4  ;;  %s422_s29 = sshll.u32 %s726_s13, 8 }
  0x33   : > { %s862_s28 = scalar_select %p36_p11, %s718_s11, %s38_s16  }
  0x34   : > { %s868_s4 = scalar_lea.hbm %s987_s0, %s422_s29  ;;  %s148_s18 = scalar_lea.vmem [#allocation2], %s410_s27 }
  0x35   : > { %s155_s5 = sshll.u32 %s148_s18, 4  ;;  %p874_p13 = pnand %p530_p12, %p847_p6  ;;  %s870_s5 = int_to_ptr.vmem [resolvable:$true] %s155_s5 }
  0x36   : > { %s878_s15 = scalar_lea.sflag [#allocation3], %s144_s23  ;;  %s614_s16 = scalar_lea.hbm %s868_s4, 256 }
  0x37   : > { %p615_p0 = scmp.ne.s32.totalorder %s868_s4, %s614_s16  ;;  %p616_p3 = pneg %p874_p13 }
  0x38   : > { %s619_s22 = scalar_lea.hbm %s987_s0, 512  ;;  %p620_p9 = scmp.lt.u32.totalorder %s868_s4, %s987_s0 }
  0x39   : > { %p617_p5 = pnand %p616_p3, %p615_p0  ;;  %p621_p1 = scmp.lt.u32.totalorder %s619_s22, %s614_s16 }
  0x3a   : > { %p623_p4 = scmp.lt.u32.totalorder %s614_s16, %s868_s4 }
  0x3b   : > { %p618_p7 = pneg %p617_p5  ;;  %p622_p2 = por %p621_p1, %p620_p9 }
  0x3d   : > { %p624_p6 = por %p623_p4, %p622_p2 }
  0x3f   : > { %p625_p8 = pnand %p624_p6, %p618_p7 }
  0x41   : > { %628 = shalt.err (!%p625_p8)
}
  0x42   : > { %s629_s23 = scalar_lea.vmem %s870_s5, 256  ;;  %s735_s3 = smov [#allocation2]  }
  0x43   : > { %p630_p12 = scmp.ne.s32.totalorder %s870_s5, %s629_s23  ;;  %s634_s18 = sshll.u32 %s735_s3, 4  ;;  %s635_s18 = int_to_ptr.vmem [resolvable:$false] %s634_s18 }
  0x44   : > { %s636_s26 = scalar_lea.vmem %s635_s18, 512  ;;  %p637_p5 = scmp.lt.s32.totalorder %s870_s5, %s635_s18 }
  0x45   : > { %p632_p11 = pnand %p630_p12, %p616_p3  ;;  %p638_p9 = scmp.lt.s32.totalorder %s636_s26, %s629_s23 }
  0x47   : > { %p633_p0 = pneg %p632_p11  ;;  %p639_p1 = por %p638_p9, %p637_p5 }
  0x49   : > { %p640_p2 = pnand %p639_p1, %p633_p0 }
  0x4b   : > { %643 = shalt.err (!%p640_p2)
}
  0x4c   : > { %524 = dma.hbm_to_vmem [thread:$0]  (!%p874_p13), %s868_s4, 256, %s870_s5, %s878_s15, %s733_s6, %s733_s6, %s734_s7  }
  0x4d   : > { %p1004_p3 = scmp.ne.s32.totalorder %s998_s21, 0 }
  0x4e   : > { %s912_s16 = sand.u32 (!%p1004_p3), 1, %s714_s10   ;;  %p1005_p7 = scmp.ne.s32.totalorder (!%p1004_p3), %s996_s19, 0 }
  0x4f   : > { %167 = sbr.rel (%p1004_p3) target bundleno = 353 (0x161), region = 28  ;;  %s414_s27 = sshll.u32 (!%p1004_p3), %s912_s16, 4 }
  0x50   : > { %s170_s22 = scalar_lea.sflag (!%p1004_p3), [#allocation3], %s912_s16  ;;  %s918_s8 = scalar_lea.vmem (!%p1004_p3), [#allocation2], %s414_s27 }
  0x56   : > { %697 = dma.done.wait (%p1005_p7), %s170_s22, 256  }
  0x57   : > { %699 = vsyncadd (%p1005_p7), %s170_s22, 4294967040  ;;  %p1006_p13 = scmp.ne.s32.totalorder %s994_s17, 0 }
  0x59   : > { %701 = dma.done.wait (%p1006_p13), [#allocation6], 2048  }
  0x5a   : > { %703 = vsyncadd (%p1006_p13), [#allocation6], 4294965248  ;;  %v202_v0 = vld [vmem:[#allocation5] sm:$0xff]  ;;  %v203_v1 = vld [vmem:[#allocation5 + $0x8] sm:$0xff]  ;;  %s197_s17 = scalar_lea.vmem [#allocation7], %s414_s27  ;;  %s423_s21 = sshll.u32 %s722_s12, 8 }
  0x5b   : > { %v204_v2 = vld [vmem:[#allocation5 + $0x10] sm:$0xff]  ;;  %v477_v3 = vpack.c.bf16 %v203_v1, %v202_v0  ;;  %v205_v4 = vld [vmem:[#allocation5 + $0x18] sm:$0xff]  ;;  %v206_v6 = vld [vmem:[#allocation5 + $0x20] sm:$0xff]  ;;  %s310_s19 = sshll.u32 %s197_s17, 4  ;;  %s938_s4 = scalar_lea.hbm %s989_s2, %s423_s21  ;;  %s933_s19 = int_to_ptr.vmem [resolvable:$true] %s310_s19 }
  0x5c   : > { %v481_v5 = vpack.c.bf16 %v205_v4, %v204_v2  ;;  %v207_v7 = vld [vmem:[#allocation5 + $0x28] sm:$0xff]  ;;  %v200_v9 = vld [vmem:[%s918_s8] sm:$0xff]  ;;  %v209_v11 = vld [vmem:[#allocation5 + $0x38] sm:$0xff]  ;;  %s296_s5 = scalar_lea.sflag [#allocation4], %s912_s16  ;;  %s644_s15 = scalar_lea.vmem %s933_s19, 256 }
  0x5d   : > { %478 = vmatprep.subr.bf16.mxu0 %v477_v3  ;;  %v485_v8 = vpack.c.bf16 %v207_v7, %v206_v6  ;;  %v208_v10 = vld [vmem:[#allocation5 + $0x30] sm:$0xff]  ;;  %474 = vmatprep.mubr.f32.mxu0 %v200_v9  ;;  %v210_v13 = vld [vmem:[#allocation5 + $0x40] sm:$0xff]  ;;  %v211_v14 = vld [vmem:[#allocation5 + $0x48] sm:$0xff]  ;;  %p645_p4 = scmp.ne.s32.totalorder %s933_s19, %s644_s15  ;;  %s736_s12 = smov [#allocation7]  }
  0x5e   : > { %480 = vmatpush3.bf16.msra.mxu0 %v477_v3  ;;  %v489_v12 = vpack.c.bf16 %v209_v11, %v208_v10  ;;  %v493_v15 = vpack.c.bf16 %v211_v14, %v210_v13  ;;  %v212_v16 = vld [vmem:[#allocation5 + $0x50] sm:$0xff]  ;;  %v213_v17 = vld [vmem:[#allocation5 + $0x58] sm:$0xff]  ;;  %v214_v19 = vld [vmem:[#allocation5 + $0x60] sm:$0xff]  ;;  %s648_s29 = sshll.u32 %s736_s12, 4  ;;  %s649_s29 = int_to_ptr.vmem [resolvable:$false] %s648_s29 }
  0x5f   : > { %482 = vmatprep.subr.bf16.mxu0 %v481_v5  ;;  %v497_v18 = vpack.c.bf16 %v213_v17, %v212_v16  ;;  %v215_v20 = vld [vmem:[#allocation5 + $0x68] sm:$0xff]  ;;  %v216_v22 = vld [vmem:[#allocation5 + $0x70] sm:$0xff]  ;;  %v217_v23 = vld [vmem:[#allocation5 + $0x78] sm:$0xff]  ;;  %p646_p6 = pnand %p645_p4, %p853_p10  ;;  %s650_s30 = scalar_lea.vmem %s649_s29, 512 }
  0x60   : > { %v501_v21 = vpack.c.bf16 %v215_v20, %v214_v19  ;;  %v505_v24 = vpack.c.bf16 %v217_v23, %v216_v22  ;;  %v201_v25 = vld [vmem:[%s918_s8 + $0x8] sm:$0xff]  ;;  %p651_p12 = scmp.lt.s32.totalorder %s933_s19, %s649_s29  ;;  %p652_p11 = scmp.lt.s32.totalorder %s650_s30, %s644_s15 }
  0x61   : > { %p647_p8 = pneg %p646_p6 }
  0x62   : > { %484 = vmatpush3.bf16.msra.mxu0 %v481_v5  ;;  %p653_p0 = por %p652_p11, %p651_p12 }
  0x63   : > { %486 = vmatprep.subr.bf16.mxu0 %v485_v8 }
  0x64   : > { %p654_p5 = pnand %p653_p0, %p647_p8 }
  0x66   : > { %488 = vmatpush3.bf16.msra.mxu0 %v485_v8 }
  0x67   : > { %490 = vmatprep.subr.bf16.mxu0 %v489_v12 }
  0x6a   : > { %492 = vmatpush3.bf16.msra.mxu0 %v489_v12 }
  0x6b   : > { %494 = vmatprep.subr.bf16.mxu0 %v493_v15 }
  0x6e   : > { %496 = vmatpush3.bf16.msra.mxu0 %v493_v15 }
  0x6f   : > { %498 = vmatprep.subr.bf16.mxu0 %v497_v18 }
  0x72   : > { %500 = vmatpush3.bf16.msra.mxu0 %v497_v18 }
  0x73   : > { %502 = vmatprep.subr.bf16.mxu0 %v501_v21 }
  0x76   : > { %504 = vmatpush3.bf16.msra.mxu0 %v501_v21 }
  0x77   : > { %506 = vmatprep.subr.bf16.mxu0 %v505_v24 }
  0x7a   : > { %508 = vmatpush3.bf16.msra.mxu0 %v505_v24 }
  0x7d   : > { %475 = vmatmul.mubr.f32.vlgmr.msra.gmra.mrb[0].mxu0 %v201_v25 }
 0x150   : > { %v476_v26 = vpop.f32.mrb[0].mxu0 }
 0x151   : > { %294 = vst [vmem:[%s197_s17 + $0x8] sm:$0xff] %v476_v26  ;;  %v284_v27 = vpop.f32.mrb[1].mxu0 }
 0x152   : > { %293 = vst [vmem:[%s197_s17] sm:$0xff] %v284_v27 }
 0x153   : > { %657 = shalt.err (!%p654_p5)
}
 0x154   : > { %s658_s23 = scalar_lea.hbm %s938_s4, 256  ;;  %s662_s26 = scalar_lea.hbm %s989_s2, 512 }
 0x155   : > { %p659_p9 = scmp.ne.s32.totalorder %s938_s4, %s658_s23  ;;  %p663_p3 = scmp.lt.u32.totalorder %s938_s4, %s989_s2 }
 0x156   : > { %p664_p7 = scmp.lt.u32.totalorder %s662_s26, %s658_s23  ;;  %p666_p4 = scmp.lt.u32.totalorder %s658_s23, %s938_s4 }
 0x157   : > { %p660_p1 = pnand %p659_p9, %p853_p10 }
 0x158   : > { %p665_p13 = por %p664_p7, %p663_p3 }
 0x159   : > { %p661_p2 = pneg %p660_p1 }
 0x15a   : > { %p667_p6 = por %p666_p4, %p665_p13 }
 0x15c   : > { %p668_p8 = pnand %p667_p6, %p661_p2 }
 0x15e   : > { %671 = shalt.err (!%p668_p8)
}
 0x15f   : > { %s737_s8 = smov 128   ;;  %s738_s17 = smov 8  }
 0x160   : > { %515 = dma.vmem_to_hbm [thread:$0]  (%p853_p10), %s933_s19, 256, %s938_s4, %s296_s5, %s737_s8, %s737_s8, %s738_s17  }
 0x161 PF: > { %s325_s21 = sand.u32 1, %s710_s9   ;;  %p1007_p12 = scmp.ne.s32.totalorder %s997_s20, 0 }
 0x162   : > { %p1008_p11 = scmp.ge.s32.totalorder %s730_s14, 2  ;;  %s326_s6 = scalar_lea.sflag [#allocation4], %s325_s21 }
 0x164   : > { %p526_p0 = pnand %p1008_p11, %p1007_p12 }
 0x166   : > { %705 = dma.done.wait (!%p526_p0), %s326_s6, 256  }
 0x167   : > { %707 = vsyncadd (!%p526_p0), %s326_s6, 4294967040  ;;  %s19_s14 = sadd.s32 1, %s730_s14   ;;  %s1009_s9 = smov %s714_s10 }
 0x168   : > { %p16_p5 = scmp.ge.s32.totalorder %s19_s14, 4   ;;  %s1010_s10 = smov %s718_s11 }
 0x169   : > { %s1011_s11 = smov %s862_s28  ;;  %s1012_s12 = smov %s726_s13 }
 0x16a   : > { %s1013_s13 = smov %s1015_s25  ;;  %18 = sbr.rel (!%p16_p5) target bundleno = 7 (0x7), region = 78 }
 0x171   :  { %331 = vsyncpa [#allocation3], 1 }
 0x172   :  { %333 = vsyncpa [#allocation3 + $0x1], 1 }
 0x173   :  { %334 = vsyncpa [#allocation6], 1 }
 0x174   :  { %335 = vsyncpa [#allocation4], 1 }
 0x175   :  { %337 = vsyncpa [#allocation4 + $0x1], 1 }

</bundles_post_ra>
